<compile_context>
chip_gen: v5e
topology: v5e:2x2
jax: 0.10.0
libtpu: 0.0.40
codegen_flags: <defaults>
</compile_context>

<pallas_src>
import jax
import jax.numpy as jnp
from jax.experimental import pallas as pl
from jax.experimental.pallas import tpu as pltpu

LANE = 128
K_TILE = 512          # reduction tile used when input_size is large


def _round_up(x, m):
    return ((x + m - 1) // m) * m


def _sublane_multiple(dtype):
    itemsize = jnp.dtype(dtype).itemsize
    if itemsize >= 4:
        return 8
    if itemsize == 2:
        return 16
    return 32


def _physical_vmem_bytes():
    # v5e/v6e: 128 MiB, v7x: 64 MiB per TensorCore. Conservative fallback.
    try:
        return int(pltpu.get_tpu_info().vmem_capacity_bytes)
    except Exception:
        return 64 << 20


def _is_multicore_chip():
    # v7x has 2 TensorCores per chip; prefer splitting N across them.
    try:
        d = jax.devices()[0]
        kind = (getattr(d, "device_kind", "") or "").lower()
        if "v7" in kind:
            return True
        return int(getattr(d, "num_cores", 1)) > 1
    except Exception:
        return False


# ---------------------------------------------------------------------------
# Kernels
# ---------------------------------------------------------------------------
def _linear_relu_kernel(x_ref, w_ref, b_ref, o_ref):
    # Single-K-block path: x (tm, K) @ w (K, tn) + b -> ReLU -> o (tm, tn)
    acc = jnp.dot(x_ref[...], w_ref[...], preferred_element_type=jnp.float32)
    acc = acc + b_ref[...].astype(jnp.float32)
    o_ref[...] = jnp.maximum(acc, 0.0).astype(o_ref.dtype)


def _linear_relu_kernel_ktiled(x_ref, w_ref, b_ref, o_ref, acc_ref):
    # K-tiled path: accumulate partial products in an f32 VMEM scratch.
    k = pl.program_id(2)

    @pl.when(k == 0)
    def _():
        acc_ref[...] = jnp.zeros_like(acc_ref)

    acc_ref[...] += jnp.dot(x_ref[...], w_ref[...],
                            preferred_element_type=jnp.float32)

    @pl.when(k == pl.num_programs(2) - 1)
    def _():
        out = acc_ref[...] + b_ref[...].astype(jnp.float32)
        o_ref[...] = jnp.maximum(out, 0.0).astype(o_ref.dtype)


# ---------------------------------------------------------------------------
# One-time parameter preparation (hoisted out of the per-call path)
# ---------------------------------------------------------------------------
def prepare_params(weight, bias, *, lane=LANE):
    """weight: [output_size, input_size] (PyTorch nn.Linear), bias: [output_size].

    Returns (w_t [Kp, Np], b2d [1, Np], (input_size, output_size)).
    K is padded only when the reduction will be grid-tiled (large input_size);
    N is always padded to the lane width so output stores stay lane-dense.
    """
    n_out, k_in = weight.shape
    np_ = _round_up(n_out, lane)
    kp = _round_up(k_in, K_TILE) if k_in > 2 * K_TILE else k_in

    w_t = jnp.zeros((kp, np_), weight.dtype).at[:k_in, :n_out].set(weight.T)
    b2d = jnp.zeros((1, np_), bias.dtype).at[0, :n_out].set(bias)
    return w_t, b2d, (k_in, n_out)


# ---------------------------------------------------------------------------
# Forward
# ---------------------------------------------------------------------------
def net2deeper_forward(x, w_t, b2d, true_dims, *, max_tm=512):
    """ReLU(x @ weight.T + bias) using the prepared (w_t, b2d)."""
    k_in, n_out = true_dims
    b_rows = x.shape[0]
    assert x.shape[1] == k_in
    kp, np_ = w_t.shape
    dtype = x.dtype
    itemsize = jnp.dtype(dtype).itemsize

    # --- row tiling (dtype-aware sublane packing) ---------------------------
    sub = _sublane_multiple(dtype)
    bp = _round_up(max(b_rows, sub), sub)
    tm = min(bp, max_tm)
    bp = _round_up(bp, tm)

    # --- reduction tiling ----------------------------------------------------
    if kp > 2 * K_TILE and kp % K_TILE == 0:
        tk = K_TILE
    else:
        tk = kp
    n_k = kp // tk

    # --- VMEM budget: whole double-buffered working set ----------------------
    physical = _physical_vmem_bytes()
    budget = max(8 << 20, int(physical * 0.4))

    def plan_bytes(tn_):
        acc = tm * tn_ * 4 if n_k > 1 else 0
        return 2 * itemsize * (tm * tk + tk * tn_ + tn_ + tm * tn_) + acc

    # --- column tiling (prefer wide, 256-multiple tiles) ----------------------
    tn = np_
    if plan_bytes(tn) > budget:
        chosen = 128
        for cand in (2048, 1024, 512, 256, 128):
            if np_ % cand == 0 and plan_bytes(cand) <= budget:
                chosen = cand
                break
        tn = chosen

    # v7x: use both TensorCores — force >= 2 parallel column tiles when possible.
    if _is_multicore_chip() and (np_ // tn) < 2 and np_ >= 2 * LANE:
        for cand in (np_ // 2, 1024, 512, 256, 128):
            if cand >= LANE and cand % LANE == 0 and np_ % cand == 0 and cand < np_:
                tn = cand
                break

    n_m = bp // tm
    n_n = np_ // tn

    # --- pad activations only when actually required --------------------------
    if bp != b_rows or kp != k_in:
        xp = jnp.zeros((bp, kp), dtype).at[:b_rows, :k_in].set(x)
    else:
        xp = x

    # --- grid ordering: keep the bigger operand's block resident --------------
    weight_bytes = kp * np_ * itemsize
    x_bytes = bp * kp * itemsize
    weight_major = (weight_bytes > x_bytes) and (n_m > 1)

    if weight_major:
        grid = (n_n, n_m, n_k)
        x_map = lambda j, i, k: (i, k)
        w_map = lambda j, i, k: (k, j)
        b_map = lambda j, i, k: (0, j)
        o_map = lambda j, i, k: (i, j)
    else:
        grid = (n_m, n_n, n_k)
        x_map = lambda i, j, k: (i, k)
        w_map = lambda i, j, k: (k, j)
        b_map = lambda i, j, k: (0, j)
        o_map = lambda i, j, k: (i, j)

    if n_k > 1:
        kernel = _linear_relu_kernel_ktiled
        scratch_shapes = [pltpu.VMEM((tm, tn), jnp.float32)]
    else:
        kernel = _linear_relu_kernel
        scratch_shapes = []

    # --- VMEM limit: always set, clamped to physical minus headroom -----------
    est_vmem = plan_bytes(tn)
    vmem_limit = min(physical - (8 << 20), max(32 << 20, int(est_vmem * 1.5)))
    vmem_limit = max(vmem_limit, est_vmem)

    # TODO(synk): on v5e with very wide resident weights and tiny batches,
    # pipeline_mode=pl.Buffered(3) on the weight BlockSpec can hide exposed DMA.

    out_padded = pl.pallas_call(
        kernel,
        out_shape=jax.ShapeDtypeStruct((bp, np_), dtype),
        grid_spec=pltpu.PrefetchScalarGridSpec(
            num_scalar_prefetch=0,
            grid=grid,
            in_specs=[
                pl.BlockSpec((tm, tk), x_map),   # activations row tile
                pl.BlockSpec((tk, tn), w_map),   # weight tile (pre-transposed)
                pl.BlockSpec((1, tn), b_map),    # bias column tile
            ],
            out_specs=pl.BlockSpec((tm, tn), o_map),
            scratch_shapes=scratch_shapes,
        ),
        compiler_params=pltpu.CompilerParams(
            dimension_semantics=("parallel", "parallel", "arbitrary"),
            vmem_limit_bytes=int(vmem_limit),
        ),
    )(xp, w_t, b2d)

    if bp != b_rows or np_ != n_out:
        return out_padded[:b_rows, :n_out]
    return out_padded


def net2deeper_reference(x, weight, bias):
    return jnp.maximum(x @ weight.T + bias, 0.0)


if __name__ == "__main__":
    # Small shapes consistent with the module: Linear(input_size=32, output_size=32)
    input_size = 32
    output_size = 32
    batch = 16

    key = jax.random.PRNGKey(0)
    kx, kw, kb, kx2, kw2, kb2, kx3 = jax.random.split(key, 7)

    # Deterministic init mimicking nn.Linear's U(-1/sqrt(in), 1/sqrt(in)).
    bound = 1.0 / (input_size ** 0.5)
    weight = jax.random.uniform(kw, (output_size, input_size),
                                dtype=jnp.float32, minval=-bound, maxval=bound)
    bias = jax.random.uniform(kb, (output_size,),
                              dtype=jnp.float32, minval=-bound, maxval=bound)
    x = jax.random.normal(kx, (batch, input_size), dtype=jnp.float32)

    w_t, b2d, true_dims = prepare_params(weight, bias)

    out = jax.block_until_ready(net2deeper_forward(x, w_t, b2d, true_dims))
    ref = net2deeper_reference(x, weight, bias)
    assert out.shape == (batch, output_size)
    assert jnp.allclose(out, ref, atol=1e-5, rtol=1e-5), "mismatch vs reference"

    # Batch that is not a multiple of the sublane tile (row-pad + slice path).
    x_odd = jax.random.normal(kx2, (10, input_size), dtype=jnp.float32)
    out_odd = jax.block_until_ready(net2deeper_forward(x_odd, w_t, b2d, true_dims))
    ref_odd = net2deeper_reference(x_odd, weight, bias)
    assert out_odd.shape == (10, output_size)
    assert jnp.allclose(out_odd, ref_odd, atol=1e-5, rtol=1e-5), "mismatch (odd batch)"

    # Larger shape: exercises the K-tiled accumulator path (and the v7x N-split).
    in2, out2, b2 = 1536, 512, 64
    bound2 = 1.0 / (in2 ** 0.5)
    weight2 = jax.random.uniform(kw2, (out2, in2), dtype=jnp.float32,
                                 minval=-bound2, maxval=bound2)
    bias2 = jax.random.uniform(kb2, (out2,), dtype=jnp.float32,
                               minval=-bound2, maxval=bound2)
    x2 = jax.random.normal(kx3, (b2, in2), dtype=jnp.float32)
    w_t2, b2d2, dims2 = prepare_params(weight2, bias2)
    out2_ = jax.block_until_ready(net2deeper_forward(x2, w_t2, b2d2, dims2))
    ref2 = net2deeper_reference(x2, weight2, bias2)
    assert out2_.shape == (b2, out2)
    assert jnp.allclose(out2_, ref2, atol=1e-3, rtol=1e-3), "mismatch (K-tiled)"

    print("KERNEL_OK")
</pallas_src>

<mosaic_0001>
module attributes {stable_mosaic.version = 11 : i64} {
  func.func @_linear_relu_kernel(%arg0: i32, %arg1: i32, %arg2: i32, %arg3: memref<16x32xf32, #tpu.memory_space<vmem>>, %arg4: memref<32x128xf32, #tpu.memory_space<vmem>>, %arg5: memref<1x128xf32, #tpu.memory_space<vmem>>, %arg6: memref<16x128xf32, #tpu.memory_space<vmem>>) attributes {dimension_semantics = [#tpu.dimension_semantics<parallel>, #tpu.dimension_semantics<parallel>, #tpu.dimension_semantics<arbitrary>], iteration_bounds = array<i64: 1, 1, 1>, scalar_prefetch = 0 : i64, scratch_operands = 0 : i64, tpu.core_type = #tpu.core_type<tc>, window_params = [{transform_indices = @transform_0, window_bounds = array<i64: 16, 32>}, {transform_indices = @transform_1, window_bounds = array<i64: 32, 128>}, {transform_indices = @transform_2, window_bounds = array<i64: 1, 128>}, {transform_indices = @transform_3, window_bounds = array<i64: 16, 128>}]} {
    %c0 = arith.constant 0 : index
    %c0_0 = arith.constant 0 : index
    %0 = vector.load %arg3[%c0, %c0_0] : memref<16x32xf32, #tpu.memory_space<vmem>>, vector<16x32xf32>
    %c0_1 = arith.constant 0 : index
    %c0_2 = arith.constant 0 : index
    %1 = vector.load %arg4[%c0_1, %c0_2] : memref<32x128xf32, #tpu.memory_space<vmem>>, vector<32x128xf32>
    %cst = arith.constant dense<0.000000e+00> : vector<16x128xf32>
    %2 = tpu.matmul %0, %1, %cst {dimension_numbers = #tpu.dot_dimension_numbers<[1], [0], [0], [1], [0, 0, 1, 1], [], []>} : vector<16x32xf32>, vector<32x128xf32>, vector<16x128xf32> -> vector<16x128xf32>
    %c0_3 = arith.constant 0 : index
    %c0_4 = arith.constant 0 : index
    %3 = vector.load %arg5[%c0_3, %c0_4] : memref<1x128xf32, #tpu.memory_space<vmem>>, vector<1x128xf32>
    %4 = vector.broadcast %3 : vector<1x128xf32> to vector<16x128xf32>
    %5 = arith.addf %2, %4 : vector<16x128xf32>
    %cst_5 = arith.constant 0.000000e+00 : f32
    %6 = vector.broadcast %cst_5 : f32 to vector<16x128xf32>
    %7 = arith.maximumf %5, %6 : vector<16x128xf32>
    %c0_6 = arith.constant 0 : index
    %c0_7 = arith.constant 0 : index
    %8 = vector.load %arg6[%c0_6, %c0_7] : memref<16x128xf32, #tpu.memory_space<vmem>>, vector<16x128xf32>
    tpu.vector_store %arg6[%c0_6, %c0_7], %7 {strides = array<i32>} : memref<16x128xf32, #tpu.memory_space<vmem>>, vector<16x128xf32>,
    return
  }
  func.func @transform_0(%arg0: i32, %arg1: i32, %arg2: i32) -> (i32, i32) {
    %c0_i32 = arith.constant 0 : i32
    return %arg0, %arg2 : i32, i32
  }
  func.func @transform_1(%arg0: i32, %arg1: i32, %arg2: i32) -> (i32, i32) {
    %c0_i32 = arith.constant 0 : i32
    return %arg2, %arg1 : i32, i32
  }
  func.func @transform_2(%arg0: i32, %arg1: i32, %arg2: i32) -> (i32, i32) {
    %c0_i32 = arith.constant 0 : i32
    %c0_i32_0 = arith.constant 0 : i32
    return %c0_i32, %arg1 : i32, i32
  }
  func.func @transform_3(%arg0: i32, %arg1: i32, %arg2: i32) -> (i32, i32) {
    %c0_i32 = arith.constant 0 : i32
    return %arg0, %arg1 : i32, i32
  }
}

</mosaic_0001>

<bundles_post_ra>
// kernel: tpu_custom_call.1
= control target key start
LH: loop header
LB: loop body
LE: loop exit
PB: predicated region body
PF: predicated region fallthrough
CT: control target
= control target key end

     0   :  { %8 = vsyncpa [#allocation3], 0  ;;  %s247_s0 = inlined_call_operand.hbm [shape: f32[16,32], index: 0, kind: input, shape index: {}]   ;;  %s248_s1 = inlined_call_operand.hbm [shape: f32[32,128], index: 1, kind: input, shape index: {}]   ;;  %s249_s2 = inlined_call_operand.vmem [shape: f32[1,128], index: 2, kind: input, shape index: {}]   ;;  %s250_s3 = inlined_call_operand.hbm [shape: f32[16,128], index: 3, kind: output, shape index: {}]  }
   0x1   :  { %9 = vsyncpa [#allocation6], 0 }
   0x2   :  { %10 = vsyncpa [#allocation4], 0  ;;  %s15_s14 = sshll.u32 %s247_s0, 4  ;;  %s201_s15 = smov [#allocation2]   ;;  %s16_s14 = int_to_ptr.hbm [resolvable:$true] %s15_s14 }
   0x3   :  { %s17_s16 = sshll.u32 %s201_s15, 4  ;;  %s28_s19 = sshll.u32 %s248_s1, 4  ;;  %s18_s16 = int_to_ptr.vmem [resolvable:$true] %s17_s16  ;;  %s29_s19 = int_to_ptr.hbm [resolvable:$true] %s28_s19 }
   0x4   :  { %s202_s20 = smov 128   ;;  %s203_s21 = smov 8  }
   0x5   :  { %23 = dma.hbm_to_vmem [thread:$0]  %s16_s14, 256, %s18_s16, [#allocation3], %s202_s20, %s202_s20, %s203_s21  }
   0x6   :  { %s204_s22 = smov [#allocation5]  }
   0x7   :  { %s30_s23 = sshll.u32 %s204_s22, 4  ;;  %s31_s23 = int_to_ptr.vmem [resolvable:$true] %s30_s23 }
   0x8   :  { %36 = dma.hbm_to_vmem [thread:$0]  %s29_s19, 512, %s31_s23, [#allocation6], %s202_s20, %s202_s20, %s203_s21  }
   0x9   :  { %195 = dma.done.wait [#allocation3], 256  }
   0xa   :  { %196 = vsyncadd [#allocation3], 4294967040 }
   0xb   :  { %197 = dma.done.wait [#allocation6], 512  }
   0xc   :  { %198 = vsyncadd [#allocation6], 4294966784  ;;  %v52_v0 = vld [vmem:[#allocation5 + $0x18] sm:$0xff]  ;;  %v51_v1 = vld [vmem:[#allocation5 + $0x10] sm:$0xff]  ;;  %vm57_vm0 = vcmask 261120   ;;  %s205_s24 = smov [#allocation7]  }
   0xd   :  { %76 = vmatpush.msra.mxu0 %v52_v0  ;;  %113 = vmatpush.msra.mxu1 %v52_v0  ;;  %v50_v2 = vld [vmem:[#allocation5 + $0x8] sm:$0xff]  ;;  %v49_v3 = vld [vmem:[#allocation5] sm:$0xff]  ;;  %v47_v4 = vld [vmem:[#allocation2] sm:$0xff]  ;;  %s95_s25 = sshll.u32 %s205_s24, 4  ;;  %s97_s28 = sshll.u32 %s250_s3, 4  ;;  %s96_s25 = int_to_ptr.vmem [resolvable:$true] %s95_s25  ;;  %s98_s28 = int_to_ptr.hbm [resolvable:$true] %s97_s28 }
   0xe   :  { %v48_v5 = vld [vmem:[#allocation2 + $0x8] sm:$0xff]  ;;  %v122_v6 = vld [vmem:[%s249_s2] ss:$0 sm:$0xff] }
   0xf   :  { %77 = vmatpush.msra.mxu0 %v51_v1  ;;  %114 = vmatpush.msra.mxu1 %v51_v1 }
  0x11   :  { %78 = vmatpush.msra.mxu0 %v50_v2  ;;  %115 = vmatpush.msra.mxu1 %v50_v2 }
  0x13   :  { %79 = vmatpush.msra.mxu0 %v49_v3  ;;  %116 = vmatpush.msra.mxu1 %v49_v3 }
  0x14   :  { %111 = vmatmul.msk.f32.vlgmr.msra.gmra.mxu0 %vm57_vm0, %v47_v4  ;;  %112 = vmatmul.msk.f32.vlgmr.msra.gmra.mxu1 %vm57_vm0, %v48_v5 }
  0x91   :  { %v81_v7 = vpop.f32.mrf.mxu0  ;;  %v84_v8 = vpop.f32.mrf.mxu1 }
  0x92   :  { %v82_v9 = vadd.f32 %v122_v6, %v81_v7  ;;  %v85_v10 = vadd.f32 %v122_v6, %v84_v8 }
  0x94   :  { %v87_v11 = vmax.f32 %v82_v9, 0.0  ;;  %v88_v12 = vmax.f32 %v85_v10, 0.0 }
  0x96   :  { %89 = vst [vmem:[#allocation7] sm:$0xff] %v87_v11 }
  0x97   :  { %90 = vst [vmem:[#allocation7 + $0x8] sm:$0xff] %v88_v12 }
  0x98   :  { %103 = dma.vmem_to_hbm [thread:$0]  %s96_s25, 256, %s98_s28, [#allocation4], %s202_s20, %s202_s20, %s203_s21  }
  0x99   :  { %199 = dma.done.wait [#allocation4], 256  }
  0x9a   :  { %200 = vsyncadd [#allocation4], 4294967040 }
  0x9b   :  { %108 = vsyncpa [#allocation3], 1 }
  0x9c   :  { %109 = vsyncpa [#allocation6], 1 }
  0x9d   :  { %110 = vsyncpa [#allocation4], 1 }

</bundles_post_ra>
